<compile_context>
chip_gen: v5e
topology: v5e:2x2
jax: 0.10.0
libtpu: 0.0.40
codegen_flags: <defaults>
</compile_context>

<pallas_src>
import dataclasses
import math
from functools import partial
from typing import Optional

import jax
import jax.numpy as jnp
from jax import lax
from jax.experimental import pallas as pl
from jax.experimental.pallas import tpu as pltpu


@dataclasses.dataclass
class EquivEncoderHParams:
    num_layers: int
    num_node_features: int
    hidden_scalar_dim: int
    hidden_vector_dim: int
    hidden_edge_dim: int
    vector_aggr: str = "mean"
    zero_cog: bool = True
    num_edge_features: int = 1
    max_distance: float = 25.0
    cutoff: bool = True
    num_fourier_features: int = 0
    use_context: bool = False
    context_type: Optional[str] = None
    context_where: str = "nodes"
    num_context_features: Optional[int] = None
    context_hidden_dims: Optional[list] = None


_LANE = 128
_MAX_TILE = 4096  # rows per block on the lane axis; per-block VMEM stays well under 2 MiB


def _plan_cols(n, max_tile=_MAX_TILE):
    """Plan tiling of the row dimension (mapped to lanes).

    Returns (tile, grid, n_pad) with n_pad a multiple of 128 and tile a multiple of 128.
    Keeps >= 2 grid blocks when the problem allows it so v7x megacore gets both cores busy.
    """
    n_pad = ((n + _LANE - 1) // _LANE) * _LANE
    if n_pad >= 2 * _LANE:
        half = ((n_pad // 2 + _LANE - 1) // _LANE) * _LANE
        tile = min(max_tile, half)
    else:
        tile = n_pad
    grid = pl.cdiv(n_pad, tile)
    return tile, grid, n_pad


# ----------------------------------------------------------------------------- kernels

def _node_kernel(x_ref, w_ref, tab_ref, o_ref):
    """Transposed node kernel.

    x_ref   : [F+4, tile]   rows 0..F-1 = h^T, row F = graph id (float), rows F+1..F+3 = pos^T
    w_ref   : [Hs, F]       = (W_node @ W_node_time)^T
    tab_ref : [Hs+3, G]     = [T_node | -mean]^T   (per-graph fused time bias + CoG)
    o_ref   : [Hs+3, tile]  = [node_states_s ; pos_centered]^T
    """
    f = w_ref.shape[1]
    hs = w_ref.shape[0]
    g = tab_ref.shape[1]
    tile = x_ref.shape[1]

    h_t = x_ref[:f, :]                       # [F, tile]
    gid = x_ref[f:f + 1, :]                  # [1, tile]  (small ints stored as f32, exact)
    pos_t = x_ref[f + 1:f + 4, :]            # [3, tile]

    iota = lax.broadcasted_iota(jnp.int32, (g, tile), 0).astype(jnp.float32)
    onehot = (gid == iota).astype(jnp.float32)                              # [G, tile]

    per_graph = jnp.dot(tab_ref[...], onehot,
                        preferred_element_type=jnp.float32)                 # [Hs+3, tile]

    o_ref[:hs, :] = jnp.dot(w_ref[...], h_t,
                            preferred_element_type=jnp.float32) + per_graph[:hs, :]
    o_ref[hs:, :] = pos_t + per_graph[hs:, :]


def _edge_kernel(max_distance, use_cutoff,
                 x_ref, centers_ref, wd_ref, wr_ref, wt_ref, o_ref):
    """Transposed edge kernel.

    x_ref       : [4, tile]        rows 0..2 = rel^T (pos_src - pos_dst), row 3 = graph id (float)
    centers_ref : [n_rbf, 1]       RBF centers
    wd_ref      : [He, 1]          = (W_edge[:1]   @ W_edge_time)^T   (distance column)
    wr_ref      : [He, n_rbf]      = (W_edge[1:]   @ W_edge_time)^T   (rbf columns)
    wt_ref      : [He, G]          = T_edge^T                         (per-graph fused time bias)
    o_ref       : [1+n_rbf+3+He, tile] = [d ; rbf ; unit ; edge_states]^T
    """
    n_rbf = centers_ref.shape[0]
    g = wt_ref.shape[1]
    tile = x_ref.shape[1]

    rel = x_ref[0:3, :]                      # [3, tile]
    gid = x_ref[3:4, :]                      # [1, tile]

    d2 = jnp.sum(rel * rel, axis=0, keepdims=True)          # [1, tile]
    d = jnp.sqrt(d2)
    inv_d = pl.reciprocal(jnp.maximum(d, 1e-12))             # exact (unit vectors stay unit)
    unit = rel * inv_d                                        # [3, tile]

    # TODO(synk): reference EdgeEmbedding RBF parameterization not provided; Gaussian expansion
    # over [0, max_distance] with cosine cutoff assumed.
    inv_width = n_rbf / max_distance
    z = (d - centers_ref[...]) * inv_width                    # [n_rbf, tile]
    rbf = jnp.exp(-0.5 * z * z)
    if use_cutoff:
        fc = 0.5 * (jnp.cos(d * (math.pi / max_distance)) + 1.0)
        fc = jnp.where(d < max_distance, fc, 0.0)
        rbf = rbf * fc

    iota = lax.broadcasted_iota(jnp.int32, (g, tile), 0).astype(jnp.float32)
    onehot = (gid == iota).astype(jnp.float32)                # [G, tile]

    es = wd_ref[...] * d                                      # [He, tile] broadcast (distance col)
    es = es + jnp.dot(wr_ref[...], rbf, preferred_element_type=jnp.float32)
    es = es + jnp.dot(wt_ref[...], onehot, preferred_element_type=jnp.float32)

    o_ref[0:1, :] = d
    o_ref[1:1 + n_rbf, :] = rbf
    o_ref[1 + n_rbf:4 + n_rbf, :] = unit
    o_ref[4 + n_rbf:, :] = es


# ----------------------------------------------------------------------------- wrappers

def node_forward(x_packed, w12T, tabT):
    """x_packed [F+4, N], w12T [Hs, F], tabT [Hs+3, G]  ->  slab [Hs+3, n_pad]."""
    width_in, n = x_packed.shape
    hs, f = w12T.shape
    g = tabT.shape[1]
    tile, grid_cols, n_pad = _plan_cols(n)
    if n_pad != n:
        x_packed = jnp.pad(x_packed, ((0, 0), (0, n_pad - n)))

    return pl.pallas_call(
        _node_kernel,
        out_shape=jax.ShapeDtypeStruct((hs + 3, n_pad), jnp.float32),
        grid=(grid_cols,),
        in_specs=[
            pl.BlockSpec((width_in, tile), lambda i: (0, i)),
            pl.BlockSpec((hs, f), lambda i: (0, 0)),
            pl.BlockSpec((hs + 3, g), lambda i: (0, 0)),
        ],
        out_specs=pl.BlockSpec((hs + 3, tile), lambda i: (0, i)),
        compiler_params=pltpu.CompilerParams(dimension_semantics=("parallel",)),
    )(x_packed, w12T, tabT)


def edge_forward(x_packed, centers, wdT, wrT, wtT, max_distance, use_cutoff):
    """x_packed [4, E] -> slab [1+n_rbf+3+He, e_pad]."""
    width_in, e = x_packed.shape
    n_rbf = centers.shape[0]
    he = wrT.shape[0]
    g = wtT.shape[1]
    width_out = 1 + n_rbf + 3 + he
    tile, grid_cols, e_pad = _plan_cols(e)
    if e_pad != e:
        x_packed = jnp.pad(x_packed, ((0, 0), (0, e_pad - e)))

    kern = partial(_edge_kernel, float(max_distance), bool(use_cutoff))
    return pl.pallas_call(
        kern,
        out_shape=jax.ShapeDtypeStruct((width_out, e_pad), jnp.float32),
        grid=(grid_cols,),
        in_specs=[
            pl.BlockSpec((width_in, tile), lambda i: (0, i)),
            pl.BlockSpec((n_rbf, 1), lambda i: (0, 0)),
            pl.BlockSpec((he, 1), lambda i: (0, 0)),
            pl.BlockSpec((he, n_rbf), lambda i: (0, 0)),
            pl.BlockSpec((he, g), lambda i: (0, 0)),
        ],
        out_specs=pl.BlockSpec((width_out, tile), lambda i: (0, i)),
        compiler_params=pltpu.CompilerParams(dimension_semantics=("parallel",)),
    )(x_packed, centers, wdT, wrT, wtT)


# ----------------------------------------------------------------------------- params

def _xavier(key, fan_in, fan_out):
    limit = math.sqrt(6.0 / (fan_in + fan_out))
    return jax.random.uniform(key, (fan_in, fan_out), jnp.float32, -limit, limit)


def init_params(key, hp: EquivEncoderHParams):
    ks = jax.random.split(key, 6)
    t_in = 1  # num_fourier_features == 0 -> identity time features
    z = lambda d: jnp.zeros((d,), jnp.float32)
    return dict(
        w_t_node=_xavier(ks[0], t_in, hp.hidden_scalar_dim), b_t_node=z(hp.hidden_scalar_dim),
        w_t_edge=_xavier(ks[1], t_in, hp.hidden_edge_dim),   b_t_edge=z(hp.hidden_edge_dim),
        w_node=_xavier(ks[2], hp.num_node_features, hp.hidden_scalar_dim),
        b_node=z(hp.hidden_scalar_dim),
        w_edge=_xavier(ks[3], 1 + hp.num_edge_features, hp.hidden_edge_dim),
        b_edge=z(hp.hidden_edge_dim),
        w_node_time=_xavier(ks[4], hp.hidden_scalar_dim, hp.hidden_scalar_dim),
        b_node_time=z(hp.hidden_scalar_dim),
        w_edge_time=_xavier(ks[5], hp.hidden_edge_dim, hp.hidden_edge_dim),
        b_edge_time=z(hp.hidden_edge_dim),
        rbf_centers=jnp.linspace(0.0, hp.max_distance, hp.num_edge_features,
                                 dtype=jnp.float32).reshape(-1, 1),   # [n_rbf, 1]
    )


# ----------------------------------------------------------------------------- forward

def equiv_encoder_forward(params, hp: EquivEncoderHParams, t, h, pos,
                          edge_index, index, num_graphs):
    f32 = jnp.float32
    src_idx = edge_index[0]
    dst_idx = edge_index[1]
    n = h.shape[0]
    hs = hp.hidden_scalar_dim
    n_rbf = params["rbf_centers"].shape[0]

    # ---- tiny per-graph / per-weight precompute in plain XLA (G and hidden dims are small) ----
    t_node = t @ params["w_t_node"] + params["b_t_node"]          # [G, Hs]
    t_edge = t @ params["w_t_edge"] + params["b_t_edge"]          # [G, He]
    # fused time tables: (t + b1) @ W2 + b2  (DenseLayer assumed purely linear)
    node_time_tab = (t_node + params["b_node"]) @ params["w_node_time"] + params["b_node_time"]
    edge_time_tab = (t_edge + params["b_edge"]) @ params["w_edge_time"] + params["b_edge_time"]
    # fused weights (transposed for the lane-dense kernels)
    w12_node_T = (params["w_node"] @ params["w_node_time"]).T     # [Hs, F]
    w1d2_T = (params["w_edge"][:1] @ params["w_edge_time"]).T     # [He, 1]
    w1r2_T = (params["w_edge"][1:] @ params["w_edge_time"]).T     # [He, n_rbf]

    # per-graph means for scatter_center (segment_sum; no dense one-hot)
    if hp.zero_cog:
        sums = jax.ops.segment_sum(pos, index, num_segments=num_graphs)                  # [G,3]
        counts = jax.ops.segment_sum(jnp.ones((n,), f32), index, num_segments=num_graphs)  # [G]
        mean_tab = sums / jnp.maximum(counts, 1.0)[:, None]
    else:
        mean_tab = jnp.zeros((num_graphs, 3), f32)

    # ---- node kernel: node_states_s + centered positions in one lane-dense pass ----
    gid_node = index.astype(f32)[None, :]                                   # [1, N]
    xn = jnp.concatenate([h.T, gid_node, pos.T], axis=0)                    # [F+4, N]
    node_tab_T = jnp.concatenate([node_time_tab, -mean_tab], axis=1).T      # [Hs+3, G]
    node_slab = node_forward(xn, w12_node_T, node_tab_T)                    # [Hs+3, n_pad]

    node_states_s = node_slab[:hs, :n].T                                    # [N, Hs]
    pos_c = node_slab[hs:, :n].T                                            # [N, 3]
    node_states_v = jnp.zeros((*pos.shape, hp.hidden_vector_dim), f32)      # [N, 3, Hv]

    # ---- edge kernel: distance / rbf / unit vector / edge_states in one lane-dense pass ----
    rel = pos_c[src_idx] - pos_c[dst_idx]                                   # [E, 3] (fused gather)
    gid_edge = index[src_idx].astype(f32)[None, :]                          # [1, E]
    xe = jnp.concatenate([rel.T, gid_edge], axis=0)                         # [4, E]
    edge_slab = edge_forward(xe, params["rbf_centers"], w1d2_T, w1r2_T,
                             edge_time_tab.T, hp.max_distance, hp.cutoff)   # [width, e_pad]

    e = rel.shape[0]
    d = edge_slab[0:1, :e].T
    rbf = edge_slab[1:1 + n_rbf, :e].T
    unit_vec = edge_slab[1 + n_rbf:4 + n_rbf, :e].T
    edge_states = edge_slab[4 + n_rbf:, :e].T

    # TODO(synk): use_context / context encoder path not exercised (use_context=False default).
    edge_attr = (d, rbf, unit_vec, edge_states)
    # TODO(synk): EQGATBackbone source not provided; return pre-backbone encoder state.
    return node_states_s, node_states_v, pos_c, edge_attr


# ----------------------------------------------------------------------------- main

if __name__ == "__main__":
    hp = EquivEncoderHParams(num_layers=2, num_node_features=8,
                             hidden_scalar_dim=32, hidden_vector_dim=8,
                             hidden_edge_dim=16, num_edge_features=4,
                             max_distance=10.0, cutoff=True)

    key = jax.random.PRNGKey(0)
    kp, kh, kpos, kt = jax.random.split(key, 4)
    params = init_params(kp, hp)

    num_graphs, nodes_per_graph = 2, 8
    n = num_graphs * nodes_per_graph
    h = jax.random.normal(kh, (n, hp.num_node_features), jnp.float32)
    pos = 2.0 * jax.random.normal(kpos, (n, 3), jnp.float32)
    t = jax.random.uniform(kt, (num_graphs, 1), jnp.float32)
    index = jnp.repeat(jnp.arange(num_graphs, dtype=jnp.int32), nodes_per_graph)

    src, dst = [], []
    for g in range(num_graphs):
        off = g * nodes_per_graph
        for a in range(nodes_per_graph):
            for b in range(nodes_per_graph):
                if a != b:
                    src.append(off + a)
                    dst.append(off + b)
    edge_index = jnp.array([src, dst], dtype=jnp.int32)   # [2, E], E = 112

    out = equiv_encoder_forward(params, hp, t, h, pos, edge_index, index, num_graphs)
    jax.block_until_ready(out)
    print("KERNEL_OK")
</pallas_src>

<mosaic_0001>
module attributes {stable_mosaic.version = 11 : i64} {
  func.func @_node_kernel(%arg0: i32, %arg1: memref<12x128xf32, #tpu.memory_space<vmem>>, %arg2: memref<32x8xf32, #tpu.memory_space<vmem>>, %arg3: memref<35x2xf32, #tpu.memory_space<vmem>>, %arg4: memref<35x128xf32, #tpu.memory_space<vmem>>) attributes {dimension_semantics = [#tpu.dimension_semantics<parallel>], iteration_bounds = array<i64: 1>, scalar_prefetch = 0 : i64, scratch_operands = 0 : i64, tpu.core_type = #tpu.core_type<tc>, window_params = [{transform_indices = @transform_0, window_bounds = array<i64: 12, 128>}, {pipeline_mode = #tpu.pipeline_mode<synchronous>, transform_indices = @transform_1, window_bounds = array<i64: 32, 8>}, {pipeline_mode = #tpu.pipeline_mode<synchronous>, transform_indices = @transform_2, window_bounds = array<i64: 35, 2>}, {transform_indices = @transform_3, window_bounds = array<i64: 35, 128>}]} {
    %c0 = arith.constant 0 : index
    %c0_0 = arith.constant 0 : index
    %0 = vector.load %arg1[%c0, %c0_0] : memref<12x128xf32, #tpu.memory_space<vmem>>, vector<8x128xf32>
    %c8 = arith.constant 8 : index
    %c0_1 = arith.constant 0 : index
    %1 = vector.load %arg1[%c8, %c0_1] : memref<12x128xf32, #tpu.memory_space<vmem>>, vector<1x128xf32>
    %c9 = arith.constant 9 : index
    %c0_2 = arith.constant 0 : index
    %2 = vector.load %arg1[%c9, %c0_2] : memref<12x128xf32, #tpu.memory_space<vmem>>, vector<3x128xf32>
    %3 = tpu.iota {dimensions = array<i32: 0>} : vector<2x128xi32>
    %4 = arith.sitofp %3 : vector<2x128xi32> to vector<2x128xf32>
    %5 = vector.broadcast %1 : vector<1x128xf32> to vector<2x128xf32>
    %6 = arith.cmpf oeq, %5, %4 : vector<2x128xf32>
    %7 = arith.extui %6 : vector<2x128xi1> to vector<2x128xi32>
    %8 = arith.sitofp %7 : vector<2x128xi32> to vector<2x128xf32>
    %c0_3 = arith.constant 0 : index
    %c0_4 = arith.constant 0 : index
    %9 = vector.load %arg3[%c0_3, %c0_4] : memref<35x2xf32, #tpu.memory_space<vmem>>, vector<35x2xf32>
    %cst = arith.constant dense<0.000000e+00> : vector<35x128xf32>
    %10 = tpu.matmul %9, %8, %cst {dimension_numbers = #tpu.dot_dimension_numbers<[1], [0], [0], [1], [0, 0, 1, 1], [], []>} : vector<35x2xf32>, vector<2x128xf32>, vector<35x128xf32> -> vector<35x128xf32>
    %c0_5 = arith.constant 0 : index
    %c0_6 = arith.constant 0 : index
    %11 = vector.load %arg2[%c0_5, %c0_6] : memref<32x8xf32, #tpu.memory_space<vmem>>, vector<32x8xf32>
    %cst_7 = arith.constant dense<0.000000e+00> : vector<32x128xf32>
    %12 = tpu.matmul %11, %0, %cst_7 {dimension_numbers = #tpu.dot_dimension_numbers<[1], [0], [0], [1], [0, 0, 1, 1], [], []>} : vector<32x8xf32>, vector<8x128xf32>, vector<32x128xf32> -> vector<32x128xf32>
    %13 = vector.extract_strided_slice %10 {offsets = [0, 0], sizes = [32, 128], strides = [1, 1]} : vector<35x128xf32> to vector<32x128xf32>
    %14 = arith.addf %12, %13 : vector<32x128xf32>
    %c0_8 = arith.constant 0 : index
    %c0_9 = arith.constant 0 : index
    %15 = vector.load %arg4[%c0_8, %c0_9] : memref<35x128xf32, #tpu.memory_space<vmem>>, vector<32x128xf32>
    tpu.vector_store %arg4[%c0_8, %c0_9], %14 {strides = array<i32>} : memref<35x128xf32, #tpu.memory_space<vmem>>, vector<32x128xf32>,
    %16 = vector.extract_strided_slice %10 {offsets = [32, 0], sizes = [3, 128], strides = [1, 1]} : vector<35x128xf32> to vector<3x128xf32>
    %17 = arith.addf %2, %16 : vector<3x128xf32>
    %c32 = arith.constant 32 : index
    %c0_10 = arith.constant 0 : index
    %18 = vector.load %arg4[%c32, %c0_10] : memref<35x128xf32, #tpu.memory_space<vmem>>, vector<3x128xf32>
    tpu.vector_store %arg4[%c32, %c0_10], %17 {strides = array<i32>} : memref<35x128xf32, #tpu.memory_space<vmem>>, vector<3x128xf32>,
    return
  }
  func.func @transform_0(%arg0: i32) -> (i32, i32) {
    %c0_i32 = arith.constant 0 : i32
    %c0_i32_0 = arith.constant 0 : i32
    return %c0_i32, %arg0 : i32, i32
  }
  func.func @transform_1(%arg0: i32) -> (i32, i32) {
    %c0_i32 = arith.constant 0 : i32
    %c0_i32_0 = arith.constant 0 : i32
    %c0_i32_1 = arith.constant 0 : i32
    return %c0_i32, %c0_i32_0 : i32, i32
  }
  func.func @transform_2(%arg0: i32) -> (i32, i32) {
    %c0_i32 = arith.constant 0 : i32
    %c0_i32_0 = arith.constant 0 : i32
    %c0_i32_1 = arith.constant 0 : i32
    return %c0_i32, %c0_i32_0 : i32, i32
  }
  func.func @transform_3(%arg0: i32) -> (i32, i32) {
    %c0_i32 = arith.constant 0 : i32
    %c0_i32_0 = arith.constant 0 : i32
    return %c0_i32, %arg0 : i32, i32
  }
}

</mosaic_0001>

<bundles_post_ra>
// kernel: tpu_custom_call.1
= control target key start
LH: loop header
LB: loop body
LE: loop exit
PB: predicated region body
PF: predicated region fallthrough
CT: control target
= control target key end

     0   :  { %vm86_vm0 = vcmask 64512   ;;  %v18_v2 = vlaneseq  ;;  %s268_s0 = inlined_call_operand.vmem [shape: f32[12,128], index: 0, kind: input, shape index: {}]   ;;  %s269_s1 = inlined_call_operand.vmem [shape: f32[32,8], index: 1, kind: input, shape index: {}]   ;;  %s270_s2 = inlined_call_operand.vmem [shape: f32[35,2], index: 2, kind: input, shape index: {}]   ;;  %s271_s3 = inlined_call_operand.hbm [shape: f32[35,128], index: 3, kind: output, shape index: {}]  }
   0x1   :  { %v15_v0 = vld [vmem:[%s268_s0] sm:$0xff]  ;;  %v83_v1 = vld [vmem:[%s269_s1 + $0x8] sm:$0xff] }
   0x2   :  { %164 = vmatpush.msra.mxu3 %v15_v0  ;;  %114 = vmatpush.msra.mxu1 %v15_v0  ;;  %v82_v3 = vld [vmem:[%s269_s1] sm:$0xff]  ;;  %v19_v4 = vshrl.u32 %v18_v2, 7  ;;  %v169_v5 = vld [vmem:[%s268_s0 + $0x8] ss:$0 sm:$0xff] }
   0x3   :  { %160 = vmatmul.msk.f32.vlgmr.msra.gmra.mxu3 %vm86_vm0, %v83_v1  ;;  %159 = vmatmul.msk.f32.vlgmr.msra.gmra.mxu1 %vm86_vm0, %v82_v3 }
   0x4   :  { %v20_v6 = vcvt.s32.f32 %v19_v4 }
   0x5   :  { %8 = vsyncpa [#allocation3], 0  ;;  %vm46_vm1 = vcmask 1041408   ;;  %v25_v7 = vld [vmem:[%s270_s2] sm:$0xff]  ;;  %vm30_vm3 = vcmask 15360   ;;  %v28_v8 = vld [vmem:[%s270_s2 + $0x18] sm:$0xff] }
   0x6   :  { %vm22_vm2 = vcmp.eq.f32.partialorder %v169_v5, %v20_v6  ;;  %v196_v9 = vmov 0.0   ;;  %v84_v11 = vld [vmem:[%s269_s1 + $0x10] sm:$0xff]  ;;  %v26_v12 = vld [vmem:[%s270_s2 + $0x8] sm:$0xff]  ;;  %v29_v13 = vld [vmem:[%s270_s2 + $0x20] sm:$0x7]  ;;  %s197_s8 = smov [#allocation2]  }
   0x7   :  { %v152_v10 = vsel %vm22_vm2, 1.0, %v196_v9  ;;  %v85_v14 = vld [vmem:[%s269_s1 + $0x18] sm:$0xff]  ;;  %v27_v15 = vld [vmem:[%s270_s2 + $0x10] sm:$0xff]  ;;  %v17_v24 = vld [vmem:[%s268_s0 + $0x9] sm:$0x7]  ;;  %s138_s9 = sshll.u32 %s197_s8, 4  ;;  %s139_s9 = int_to_ptr.vmem [resolvable:$true] %s138_s9 }
   0x8   :  { %153 = vmatpush.msk.msra.mxu0 %vm46_vm1, %v152_v10  ;;  %163 = vmatpush.msk.msra.mxu2 %vm46_vm1, %v152_v10  ;;  %s140_s11 = sshll.u32 %s271_s3, 4  ;;  %s198_s12 = smov 128   ;;  %s141_s11 = int_to_ptr.hbm [resolvable:$true] %s140_s11 }
   0x9   :  { %154 = vmatmul.msk.f32.vlgmr.msra.gmra.mxu0 %vm30_vm3, %v25_v7  ;;  %157 = vmatmul.msk.f32.vlgmr.msra.gmra.mxu2 %vm30_vm3, %v28_v8  ;;  %s199_s13 = smov 8  }
   0xb   :  { %161 = vmatmul.msk.f32.gmra.mxu3 %vm86_vm0, %v84_v11 }
  0x11   :  { %155 = vmatmul.msk.f32.gmra.mxu0 %vm30_vm3, %v26_v12  ;;  %158 = vmatmul.msk.f32.gmra.mxu2 %vm30_vm3, %v29_v13 }
  0x13   :  { %162 = vmatmul.msk.f32.gmra.mxu3 %vm86_vm0, %v85_v14 }
  0x19   :  { %156 = vmatmul.msk.f32.gmra.mxu0 %vm30_vm3, %v27_v15 }
  0x80   :  { %v116_v16 = vpop.f32.mrf.mxu1 }
  0x86   :  { %v119_v17 = vpop.f32.mrf.mxu3  ;;  %v67_v18 = vpop.f32.mrf.mxu0 }
  0x87   :  { %v117_v19 = vadd.f32 %v116_v16, %v67_v18 }
  0x89   :  { %128 = vst [vmem:[#allocation2] sm:$0xff] %v117_v19 }
  0x8c   :  { %v76_v20 = vpop.f32.mrf.mxu2 }
  0x8e   :  { %v122_v21 = vpop.f32.mrf.mxu3  ;;  %v70_v22 = vpop.f32.mrf.mxu0 }
  0x8f   :  { %v120_v23 = vadd.f32 %v119_v17, %v70_v22 }
  0x91   :  { %129 = vst [vmem:[#allocation2 + $0x8] sm:$0xff] %v120_v23 }
  0x94   :  { %v79_v25 = vpop.f32.mrf.mxu2 }
  0x95   :  { %v132_v27 = vadd.f32 %v79_v25, %v17_v24 }
  0x96   :  { %v125_v26 = vpop.f32.mrf.mxu3  ;;  %v73_v29 = vpop.f32.mrf.mxu0 }
  0x97   :  { %v126_v28 = vadd.f32 %v125_v26, %v76_v20  ;;  %v123_v30 = vadd.f32 %v122_v21, %v73_v29  ;;  %133 = vst [vmem:[#allocation2 + $0x20] sm:$0x7] %v132_v27 }
  0x99   :  { %131 = vst [vmem:[#allocation2 + $0x18] sm:$0xff] %v126_v28 }
  0x9a   :  { %130 = vst [vmem:[#allocation2 + $0x10] sm:$0xff] %v123_v30 }
  0x9b   :  { %146 = dma.vmem_to_hbm [thread:$0]  %s139_s9, 640, %s141_s11, [#allocation3], %s198_s12, %s198_s12, %s199_s13  }
  0x9c   :  { %194 = dma.done.wait [#allocation3], 640  }
  0x9d   :  { %195 = vsyncadd [#allocation3], 4294966656 }
  0x9e   :  { %151 = vsyncpa [#allocation3], 1 }

</bundles_post_ra>
